<compile_context>
chip_gen: v5e
topology: v5e:2x2
jax: 0.10.0
libtpu: 0.0.40
codegen_flags: <defaults>
</compile_context>

<pallas_src>
import functools

import jax
import jax.numpy as jnp
from jax.experimental import pallas as pl
from jax.experimental.pallas import tpu as pltpu

_LANE = 128
_SUBLANE = 8
_ROW_ELEMS = _SUBLANE * _LANE                 # 1024: dense lane-packed column count
_TARGET_BLOCK_BYTES = 4 * 1024 * 1024         # ~4 MiB per input per grid step
_VMEM_LIMIT_BYTES = 32 * 1024 * 1024          # 2 inputs x 2 buffers x 4 MiB + headroom


@functools.lru_cache(maxsize=1)
def _detect_num_tensorcores():
    """Best-effort TensorCore count (2 on v7x, 1 on v5e/v6e). Defaults to 1."""
    try:
        info = pltpu.get_tpu_info()
    except Exception:
        return 1
    for name in ("num_tensorcores", "num_tensor_cores", "tensorcore_count"):
        v = getattr(info, name, None)
        if isinstance(v, int) and v >= 1:
            return min(int(v), 2)
    return 1


def _sse_kernel(a_ref, b_ref, o_ref, acc_ref, *, n_valid_rows, ragged):
    """Accumulate sum((a-b)^2) over this core's row-blocks; one scalar per core."""
    c = pl.program_id(0)              # outer, "parallel" (megacore) axis
    j = pl.program_id(1)              # inner, "arbitrary" reduction axis
    n_inner = pl.num_programs(1)
    tile_rows = a_ref.shape[0]

    @pl.when(j == 0)
    def _init():
        acc_ref[...] = jnp.zeros_like(acc_ref)

    # Squared differences in f32 (no-op cast for f32, upcast for bf16 inputs).
    d = a_ref[...].astype(jnp.float32) - b_ref[...].astype(jnp.float32)
    sq = d * d

    if not ragged:
        # Fast path: every block is fully valid -- no masking anywhere.
        acc_ref[...] += jnp.sum(sq, axis=0, keepdims=True)
    else:
        row_start = (c * n_inner + j) * tile_rows
        rows_left = n_valid_rows - row_start

        @pl.when(rows_left >= tile_rows)              # full block: unmasked
        def _full():
            acc_ref[...] += jnp.sum(sq, axis=0, keepdims=True)

        @pl.when(jnp.logical_and(rows_left > 0, rows_left < tile_rows))
        def _partial():                               # boundary block: row mask
            rows = jax.lax.broadcasted_iota(jnp.int32, (tile_rows, 1), 0)
            # Use where (NOT multiply-by-mask): the OOB rows of the partial DMA
            # are undefined and could hold NaN/Inf in `sq`; select drops them.
            masked = jnp.where(rows < rows_left, sq, jnp.float32(0.0))
            acc_ref[...] += jnp.sum(masked, axis=0, keepdims=True)
        # rows_left <= 0: clamped duplicate block (only possible on an extra
        # core step) -- its DMA does happen, but its contribution is skipped.

    @pl.when(j == n_inner - 1)
    def _finalize():
        o_ref[0, 0] = jnp.sum(acc_ref[...])           # single cross-lane reduce


@functools.partial(jax.jit, static_argnames=("num_cores",))
def psnr(im1, im2, num_cores=None):
    """PSNR between two images, semantics of the reference PyTorch module."""
    assert im1.shape == im2.shape, "PSNR requires identical shapes"
    n_elem = im1.size
    assert n_elem > 0, "PSNR of empty tensors is undefined"
    itemsize = jnp.dtype(im1.dtype).itemsize

    # Zero-copy 2-D lane-friendly view (no jnp.pad full-copy on normal inputs).
    if n_elem % _ROW_ELEMS == 0:
        n_cols = _ROW_ELEMS
        n_rows = n_elem // n_cols
        a2 = im1.reshape(n_rows, n_cols)
        b2 = im2.reshape(n_rows, n_cols)
    elif im1.ndim >= 2 and 16 * im1.shape[-1] * itemsize <= _TARGET_BLOCK_BYTES:
        n_cols = im1.shape[-1]
        n_rows = n_elem // n_cols
        a2 = im1.reshape(n_rows, n_cols)
        b2 = im2.reshape(n_rows, n_cols)
    else:
        # Rare fallback (odd-length 1-D input / gigantic last dim): one pad
        # copy so the dense view applies.  Zero pad in BOTH inputs adds 0.
        pad = (-n_elem) % _ROW_ELEMS
        a2 = jnp.pad(im1.reshape(-1), (0, pad)).reshape(-1, _ROW_ELEMS)
        b2 = jnp.pad(im2.reshape(-1), (0, pad)).reshape(-1, _ROW_ELEMS)
        n_cols = _ROW_ELEMS
        n_rows = a2.shape[0]

    # Large blocks keep the ~0.35 us per-grid-step overhead negligible.
    target_rows = max(1, _TARGET_BLOCK_BYTES // (n_cols * itemsize))
    if target_rows >= n_rows:
        tile_rows = n_rows                       # one block; block dim == full dim
    else:
        tile_rows = min(n_rows, max(16, (target_rows // 16) * 16))

    n_row_blocks = pl.cdiv(n_rows, tile_rows)
    if num_cores is None:
        num_cores = _detect_num_tensorcores()
    num_cores = max(1, min(int(num_cores), n_row_blocks))
    n_inner = pl.cdiv(n_row_blocks, num_cores)
    ragged = (n_rows % tile_rows != 0) or (n_row_blocks % num_cores != 0)

    def in_map(c, j):
        blk = c * n_inner + j
        # Clamp so the (at most one) extra block on the last core re-fetches a
        # valid block; its contribution is skipped inside the kernel.
        return (jnp.minimum(blk, n_row_blocks - 1), 0)

    kernel = functools.partial(_sse_kernel, n_valid_rows=n_rows, ragged=ragged)

    partials = pl.pallas_call(
        kernel,
        out_shape=jax.ShapeDtypeStruct((num_cores, 1), jnp.float32),
        grid=(num_cores, n_inner),
        in_specs=[
            pl.BlockSpec((tile_rows, n_cols), in_map),
            pl.BlockSpec((tile_rows, n_cols), in_map),
        ],
        out_specs=pl.BlockSpec((1, 1), lambda c, j: (c, 0),
                               memory_space=pltpu.SMEM),
        scratch_shapes=[pltpu.VMEM((1, n_cols), jnp.float32)],
        compiler_params=pltpu.CompilerParams(
            dimension_semantics=("parallel", "arbitrary"),
            vmem_limit_bytes=_VMEM_LIMIT_BYTES),
    )(a2, b2)

    sse = jnp.sum(partials)
    mse = sse / jnp.float32(n_elem)
    # Scalar epilogue (O(1)) in plain JAX: 10*log10(1/MSE), clamp to [0, 99.99];
    # the reference module's .mean() on a scalar is the identity.
    a_db = 10.0 * jnp.log10(jnp.float32(1.0) / mse)
    return jnp.clip(a_db, 0.0, 99.99)


def _reference_psnr(im1, im2):
    mse = jnp.mean((im1.astype(jnp.float32) - im2.astype(jnp.float32)) ** 2)
    return jnp.clip(10.0 * jnp.log10(1.0 / mse), 0.0, 99.99)


if __name__ == "__main__":
    key = jax.random.PRNGKey(0)
    k1, k2, k3, k4 = jax.random.split(key, 4)

    # Primary test: small NCHW image-like inputs (batch=2, channels=4, 16x16).
    im1 = jax.random.uniform(k1, (2, 4, 16, 16), dtype=jnp.float32)
    im2 = jax.random.uniform(k2, (2, 4, 16, 16), dtype=jnp.float32)
    out = jax.block_until_ready(psnr(im1, im2))
    ref = _reference_psnr(im1, im2)
    assert jnp.allclose(out, ref, rtol=1e-5, atol=1e-5), (out, ref)

    # Secondary test: element count NOT a multiple of 1024 -- exercises the
    # zero-copy (leading-dims, last-dim) view (no jnp.pad copy path).
    jm1 = jax.random.uniform(k3, (2, 3, 17, 23), dtype=jnp.float32)
    jm2 = jax.random.uniform(k4, (2, 3, 17, 23), dtype=jnp.float32)
    out2 = jax.block_until_ready(psnr(jm1, jm2))
    ref2 = _reference_psnr(jm1, jm2)
    assert jnp.allclose(out2, ref2, rtol=1e-5, atol=1e-5), (out2, ref2)

    print("KERNEL_OK")
</pallas_src>

<mosaic_0001>
module attributes {stable_mosaic.version = 11 : i64} {
  func.func @_sse_kernel(%arg0: i32, %arg1: i32, %arg2: memref<2x1024xf32, #tpu.memory_space<vmem>>, %arg3: memref<2x1024xf32, #tpu.memory_space<vmem>>, %arg4: memref<1x1xf32, #tpu.memory_space<smem>>, %arg5: memref<1x1024xf32, #tpu.memory_space<vmem>>) attributes {dimension_semantics = [#tpu.dimension_semantics<parallel>, #tpu.dimension_semantics<arbitrary>], iteration_bounds = array<i64: 1, 1>, scalar_prefetch = 0 : i64, scratch_operands = 1 : i64, tpu.core_type = #tpu.core_type<tc>, window_params = [{transform_indices = @transform_0, window_bounds = array<i64: 2, 1024>}, {transform_indices = @transform_1, window_bounds = array<i64: 2, 1024>}, {transform_indices = @transform_2, window_bounds = array<i64: 1, 1>}]} {
    %c0_i32 = arith.constant 0 : i32
    %0 = arith.cmpi eq, %arg1, %c0_i32 : i32
    %1 = arith.extui %0 : i1 to i32
    %c0_i32_0 = arith.constant 0 : i32
    %2 = arith.cmpi ne, %1, %c0_i32_0 : i32
    scf.if %2 {
      %cst_10 = arith.constant 0.000000e+00 : f32
      %15 = vector.broadcast %cst_10 : f32 to vector<1x1024xf32>
      %c0_11 = arith.constant 0 : index
      %c0_12 = arith.constant 0 : index
      %16 = vector.load %arg5[%c0_11, %c0_12] : memref<1x1024xf32, #tpu.memory_space<vmem>>, vector<1x1024xf32>
      tpu.vector_store %arg5[%c0_11, %c0_12], %15 {strides = array<i32>} : memref<1x1024xf32, #tpu.memory_space<vmem>>, vector<1x1024xf32>,
    } else {
    }
    %c0 = arith.constant 0 : index
    %c0_1 = arith.constant 0 : index
    %3 = vector.load %arg2[%c0, %c0_1] : memref<2x1024xf32, #tpu.memory_space<vmem>>, vector<2x1024xf32>
    %c0_2 = arith.constant 0 : index
    %c0_3 = arith.constant 0 : index
    %4 = vector.load %arg3[%c0_2, %c0_3] : memref<2x1024xf32, #tpu.memory_space<vmem>>, vector<2x1024xf32>
    %5 = arith.subf %3, %4 : vector<2x1024xf32>
    %6 = arith.mulf %5, %5 : vector<2x1024xf32>
    %c0_4 = arith.constant 0 : index
    %c0_5 = arith.constant 0 : index
    %7 = vector.load %arg5[%c0_4, %c0_5] : memref<1x1024xf32, #tpu.memory_space<vmem>>, vector<1x1024xf32>
    %cst = arith.constant dense<0.000000e+00> : vector<1024xf32>
    %8 = vector.multi_reduction <add>, %6, %cst [0] : vector<2x1024xf32> to vector<1024xf32>
    %9 = vector.shape_cast %8 : vector<1024xf32> to vector<1x1024xf32>
    %10 = arith.addf %7, %9 : vector<1x1024xf32>
    %c0_6 = arith.constant 0 : index
    %c0_7 = arith.constant 0 : index
    %11 = vector.load %arg5[%c0_6, %c0_7] : memref<1x1024xf32, #tpu.memory_space<vmem>>, vector<1x1024xf32>
    tpu.vector_store %arg5[%c0_6, %c0_7], %10 {strides = array<i32>} : memref<1x1024xf32, #tpu.memory_space<vmem>>, vector<1x1024xf32>,
    %c0_i32_8 = arith.constant 0 : i32
    %12 = arith.cmpi eq, %arg1, %c0_i32_8 : i32
    %13 = arith.extui %12 : i1 to i32
    %c0_i32_9 = arith.constant 0 : i32
    %14 = arith.cmpi ne, %13, %c0_i32_9 : i32
    scf.if %14 {
      %c0_10 = arith.constant 0 : index
      %c0_11 = arith.constant 0 : index
      %15 = vector.load %arg5[%c0_10, %c0_11] : memref<1x1024xf32, #tpu.memory_space<vmem>>, vector<1x1024xf32>
      %16 = vector.shape_cast %15 : vector<1x1024xf32> to vector<1x1x1024xf32>
      %cst_12 = arith.constant dense<0.000000e+00> : vector<1xf32>
      %17 = vector.multi_reduction <add>, %16, %cst_12 [1, 2] : vector<1x1x1024xf32> to vector<1xf32>
      %18 = vector.shape_cast %17 : vector<1xf32> to vector<1x1x1xf32>
      %19 = vector.extract %18[0, 0, 0] : f32 from vector<1x1x1xf32>
      %c0_13 = arith.constant 0 : index
      %c0_14 = arith.constant 0 : index
      %20 = memref.load %arg4[%c0_13, %c0_14] : memref<1x1xf32, #tpu.memory_space<smem>>
      memref.store %19, %arg4[%c0_13, %c0_14] : memref<1x1xf32, #tpu.memory_space<smem>>
    } else {
    }
    return
  }
  func.func @transform_0(%arg0: i32, %arg1: i32) -> (i32, i32) {
    %c1_i32 = arith.constant 1 : i32
    %0 = arith.muli %arg0, %c1_i32 : i32
    %1 = arith.addi %0, %arg1 : i32
    %c0_i32 = arith.constant 0 : i32
    %2 = arith.minsi %1, %c0_i32 : i32
    %c0_i32_0 = arith.constant 0 : i32
    %c0_i32_1 = arith.constant 0 : i32
    return %2, %c0_i32_0 : i32, i32
  }
  func.func @transform_1(%arg0: i32, %arg1: i32) -> (i32, i32) {
    %c1_i32 = arith.constant 1 : i32
    %0 = arith.muli %arg0, %c1_i32 : i32
    %1 = arith.addi %0, %arg1 : i32
    %c0_i32 = arith.constant 0 : i32
    %2 = arith.minsi %1, %c0_i32 : i32
    %c0_i32_0 = arith.constant 0 : i32
    %c0_i32_1 = arith.constant 0 : i32
    return %2, %c0_i32_0 : i32, i32
  }
  func.func @transform_2(%arg0: i32, %arg1: i32) -> (i32, i32) {
    %c0_i32 = arith.constant 0 : i32
    %c0_i32_0 = arith.constant 0 : i32
    return %arg0, %c0_i32 : i32, i32
  }
}

</mosaic_0001>

<bundles_post_ra>
// kernel: psnr.1
= control target key start
LH: loop header
LB: loop body
LE: loop exit
PB: predicated region body
PF: predicated region fallthrough
CT: control target
= control target key end

     0   :  { %s336_s0 = inlined_call_operand.vmem [shape: f32[2,1024], index: 0, kind: input, shape index: {}]   ;;  %s337_s1 = inlined_call_operand.vmem [shape: f32[2,1024], index: 1, kind: input, shape index: {}]   ;;  %s338_s2 = inlined_call_operand.hbm [shape: f32[1,1], index: 2, kind: output, shape index: {}]  }
   0x1   :  { %v77_v0 = vld [vmem:[%s336_s0] sm:$0xff]  ;;  %v78_v1 = vld [vmem:[%s336_s0 + $0x8] sm:$0xff] }
   0x2   :  { %v79_v2 = vld [vmem:[%s337_s1] sm:$0xff]  ;;  %v80_v3 = vld [vmem:[%s337_s1 + $0x8] sm:$0xff] }
   0x3   :  { %v81_v4 = vsub.f32 %v77_v0, %v79_v2 }
   0x4   :  { %7 = vsyncpa [#allocation4], 0  ;;  %v82_v5 = vsub.f32 %v78_v1, %v80_v3  ;;  %vm107_vm0 = vcmask 1041408   ;;  %vm179_vm1 = vcmask 1040384   ;;  %vm181_vm2 = vcmask 1042434   ;;  %s247_s17 = sshll.u32 %s338_s2, 4  ;;  %s248_s17 = int_to_ptr.hbm [resolvable:$true] %s247_s17 }
   0x5   :  { %v83_v6 = vmul.f32 %v81_v4, %v81_v4  ;;  %vm184_vm3 = vcmask 1044484   ;;  %vm186_vm4 = vcmask 1046534   ;;  %vm188_vm5 = vcmask 1045508   ;;  %s286_s19 = smov [#allocation3]  }
   0x6   :  { %v84_v7 = vmul.f32 %v82_v5, %v82_v5  ;;  %vm190_vm6 = vcmask 1043456  }
   0x7   :  { %88 = vst [vmem:[#allocation1] ss:$4 sm:$0xff] %v83_v6 }
   0x8   :  { %90 = vst [vmem:[#allocation1 + $0x20] ss:$4 sm:$0xff] %v84_v7 }
   0xe   :  { %v91_v8 = vld.sshfl [vmem:[#allocation1] sm:$0xff pattern:$0x73625140]  ;;  %v92_v9 = vld.sshfl [vmem:[#allocation1 + $0x8] sm:$0xff pattern:$0x73625140] }
   0xf   :  { %v93_v10 = vld.sshfl [vmem:[#allocation1 + $0x10] sm:$0xff pattern:$0x73625140]  ;;  %v94_v11 = vld.sshfl [vmem:[#allocation1 + $0x18] sm:$0xff pattern:$0x73625140] }
  0x10   :  { %v95_v12 = vld.sshfl [vmem:[#allocation1 + $0x20] sm:$0xff pattern:$0x73625140]  ;;  %v96_v13 = vld.sshfl [vmem:[#allocation1 + $0x28] sm:$0xff pattern:$0x73625140] }
  0x11   :  { %v97_v14 = vld.sshfl [vmem:[#allocation1 + $0x30] sm:$0xff pattern:$0x73625140]  ;;  %v98_v15 = vld.sshfl [vmem:[#allocation1 + $0x38] sm:$0xff pattern:$0x73625140] }
  0x12   :  { %v108_v16 = vsel %vm107_vm0, %v91_v8, 0.0  ;;  %v115_v17 = vsel %vm107_vm0, %v92_v9, 0.0  ;;  %v122_v18 = vsel %vm107_vm0, %v93_v10, 0.0  ;;  %v129_v19 = vsel %vm107_vm0, %v94_v11, 0.0 }
  0x13   :  { %v109_v20 = vrot.slane %v108_v16, 4  ;;  %v116_v21 = vrot.slane %v115_v17, 4  ;;  %v123_v22 = vrot.slane %v122_v18, 4  ;;  %v130_v23 = vrot.slane %v129_v19, 4 }
  0x14   :  { %v136_v24 = vsel %vm107_vm0, %v95_v12, 0.0  ;;  %v143_v25 = vsel %vm107_vm0, %v96_v13, 0.0  ;;  %v150_v26 = vsel %vm107_vm0, %v97_v14, 0.0  ;;  %v157_v27 = vsel %vm107_vm0, %v98_v15, 0.0 }
  0x15   :  { %v110_v28 = vadd.f32 %v109_v20, %v108_v16  ;;  %v117_v29 = vadd.f32 %v116_v21, %v115_v17  ;;  %v124_v30 = vadd.f32 %v123_v22, %v122_v18  ;;  %v131_v31 = vadd.f32 %v130_v23, %v129_v19 }
  0x16   :  { %v137_v32 = vrot.slane %v136_v24, 4  ;;  %v144_v33 = vrot.slane %v143_v25, 4  ;;  %v151_v34 = vrot.slane %v150_v26, 4  ;;  %v158_v35 = vrot.slane %v157_v27, 4 }
  0x17   :  { %v111_v36 = vrot.slane %v110_v28, 2  ;;  %v118_v37 = vrot.slane %v117_v29, 2  ;;  %v125_v38 = vrot.slane %v124_v30, 2  ;;  %v132_v39 = vrot.slane %v131_v31, 2 }
  0x18   :  { %v138_v40 = vadd.f32 %v137_v32, %v136_v24  ;;  %v145_v41 = vadd.f32 %v144_v33, %v143_v25  ;;  %v152_v42 = vadd.f32 %v151_v34, %v150_v26  ;;  %v159_v43 = vadd.f32 %v158_v35, %v157_v27 }
  0x19   :  { %v112_v44 = vadd.f32 %v111_v36, %v110_v28  ;;  %v119_v45 = vadd.f32 %v118_v37, %v117_v29  ;;  %v126_v46 = vadd.f32 %v125_v38, %v124_v30  ;;  %v133_v47 = vadd.f32 %v132_v39, %v131_v31 }
  0x1a   :  { %v139_v48 = vrot.slane %v138_v40, 2  ;;  %v146_v49 = vrot.slane %v145_v41, 2  ;;  %v153_v50 = vrot.slane %v152_v42, 2  ;;  %v160_v51 = vrot.slane %v159_v43, 2 }
  0x1b   :  { %v113_v52 = vrot.slane %v112_v44, 1  ;;  %v120_v53 = vrot.slane %v119_v45, 1  ;;  %v127_v54 = vrot.slane %v126_v46, 1  ;;  %v134_v55 = vrot.slane %v133_v47, 1 }
  0x1c   :  { %v140_v56 = vadd.f32 %v139_v48, %v138_v40  ;;  %v147_v57 = vadd.f32 %v146_v49, %v145_v41  ;;  %v154_v58 = vadd.f32 %v153_v50, %v152_v42  ;;  %v161_v59 = vadd.f32 %v160_v51, %v159_v43 }
  0x1d   :  { %v114_v60 = vadd.f32 %v113_v52, %v112_v44  ;;  %v121_v61 = vadd.f32 %v120_v53, %v119_v45  ;;  %v128_v62 = vadd.f32 %v127_v54, %v126_v46  ;;  %v135_v63 = vadd.f32 %v134_v55, %v133_v47 }
  0x1e   :  { %v141_v0 = vrot.slane %v140_v56, 1  ;;  %v148_v1 = vrot.slane %v147_v57, 1  ;;  %v155_v2 = vrot.slane %v154_v58, 1  ;;  %v162_v3 = vrot.slane %v161_v59, 1 }
  0x1f   :  { %v172_v4 = vrot.slane %v121_v61, 7  ;;  %v173_v5 = vrot.slane %v128_v62, 6  ;;  %v174_v6 = vrot.slane %v135_v63, 5 }
  0x20   :  { %v142_v7 = vadd.f32 %v141_v0, %v140_v56  ;;  %v149_v8 = vadd.f32 %v148_v1, %v147_v57  ;;  %v156_v9 = vadd.f32 %v155_v2, %v154_v58  ;;  %v163_v10 = vadd.f32 %v162_v3, %v161_v59 }
  0x21   :  { %v180_v11 = vsel %vm179_vm1, %v114_v60, %v172_v4  ;;  %v182_v12 = vsel %vm181_vm2, %v173_v5, %v174_v6 }
  0x22   :  { %v175_v13 = vrot.slane %v142_v7, 4  ;;  %v176_v14 = vrot.slane %v149_v8, 3  ;;  %v177_v15 = vrot.slane %v156_v9, 2  ;;  %v178_v16 = vrot.slane %v163_v10, 1 }
  0x23   :  { %v183_v17 = vsel %vm107_vm0, %v180_v11, %v182_v12 }
  0x24   :  { %v185_v18 = vsel %vm184_vm3, %v175_v13, %v176_v14  ;;  %v187_v19 = vsel %vm186_vm4, %v177_v15, %v178_v16 }
  0x25   :  { %v189_v20 = vsel %vm188_vm5, %v185_v18, %v187_v19 }
  0x26   :  { %v191_v21 = vsel %vm190_vm6, %v183_v17, %v189_v20 }
  0x27   :  { %v200_v22 = vperm.slane %v191_v21, 0  ;;  %v201_v23 = vperm.slane %v191_v21, 1  ;;  %v202_v24 = vperm.slane %v191_v21, 2  ;;  %v203_v25 = vperm.slane %v191_v21, 3 }
  0x28   :  { %v204_v26 = vperm.slane %v191_v21, 4  ;;  %v205_v31 = vperm.slane %v191_v21, 5  ;;  %v206_v34 = vperm.slane %v191_v21, 6  ;;  %v207_v37 = vperm.slane %v191_v21, 7 }
  0x29   :  { %v216_v27 = vsel %vm179_vm1, %v200_v22, 0.0  ;;  %v217_v28 = vsel %vm179_vm1, %v201_v23, 0.0  ;;  %v219_v29 = vsel %vm179_vm1, %v202_v24, 0.0  ;;  %v221_v32 = vsel %vm179_vm1, %v203_v25, 0.0 }
  0x2a   :  { %v218_v30 = vadd.f32 %v217_v28, %v216_v27  ;;  %v223_v35 = vsel %vm179_vm1, %v204_v26, 0.0  ;;  %v225_v38 = vsel %vm179_vm1, %v205_v31, 0.0  ;;  %v227_v40 = vsel %vm179_vm1, %v206_v34, 0.0 }
  0x2b   :  { %v229_v42 = vsel %vm179_vm1, %v207_v37, 0.0 }
  0x2c   :  { %v220_v33 = vadd.f32 %v219_v29, %v218_v30 }
  0x2e   :  { %v222_v36 = vadd.f32 %v221_v32, %v220_v33 }
  0x30   :  { %v224_v39 = vadd.f32 %v223_v35, %v222_v36 }
  0x32   :  { %v226_v41 = vadd.f32 %v225_v38, %v224_v39 }
  0x34   :  { %v228_v43 = vadd.f32 %v227_v40, %v226_v41 }
  0x36   :  { %v230_v44 = vadd.f32 %v229_v42, %v228_v43 }
  0x38   :  { %231 = vadd.xlane.f32.xlu0 %v230_v44 }
  0xab   :  { %v232_v45 = vpop.xlane.xlu0 %231 }
  0xac   :  { %v233_v46 = vrot.slane %v232_v45, 4 }
  0xae   :  { %v234_v47 = vadd.f32 %v233_v46, %v232_v45 }
  0xb0   :  { %v235_v48 = vrot.slane %v234_v47, 2 }
  0xb2   :  { %v236_v49 = vadd.f32 %v235_v48, %v234_v47 }
  0xb4   :  { %v237_v50 = vrot.slane %v236_v49, 1 }
  0xb6   :  { %v238_v51 = vadd.f32 %v237_v50, %v236_v49 }
  0xb8   :  { %269 = vpush %v238_v51 }
  0xe9   :  { %s270_s18 = spop %269 }
  0xea   :  { %241 = sst [smem:[#allocation3]] %s270_s18 }
  0xeb   :  { %250 = dma.smem_to_hbm %s286_s19, 16, %s248_s17, [#allocation4]  }
  0xec   :  { %284 = dma.done.wait [#allocation4], 16  }
  0xed   :  { %285 = vsyncadd [#allocation4], 4294967280 }
  0xee   :  { %255 = sfence }
  0xef   :  { %256 = vsyncpa [#allocation4], 1 }

</bundles_post_ra>
